<compile_context>
chip_gen: v6e
topology: v6e:2x2x1
jax: 0.10.0
libtpu: 0.0.40
codegen_flags: <defaults>
</compile_context>

<pallas_src>
from functools import partial

import jax
import jax.numpy as jnp
from jax.experimental import pallas as pl
from jax.experimental.pallas import tpu as pltpu


def af_kernel(x_ref, w1t_ref, b1_ref, w2t_ref, b2_ref, o_ref, *, inv_hw):
    # x_ref  : VMEM (Bt, C, HWp)   -- Bt batch samples, spatial flattened + lane-padded
    # w1t_ref: VMEM (C, C)         -- first 1x1 conv weight (channel part), transposed
    # b1_ref : VMEM (1, C)         -- first bias with the SNR term folded in
    # w2t_ref: VMEM (C, C)         -- second 1x1 conv weight, transposed
    # b2_ref : VMEM (1, C)
    # o_ref  : VMEM (Bt, C, HWp)
    x = x_ref[...]
    xf = x.astype(jnp.float32)                        # f32 accumulation even for bf16 inputs

    # adaptive_avg_pool2d -> per-(b, c) spatial mean. Zero padding along the lane
    # axis does not change the sum; divide by the true H*W.
    mean = jnp.sum(xf, axis=-1) * inv_hw              # (Bt, C)

    # Channel MLP as two small batched matmuls (SNR already folded into b1).
    h = jnp.dot(mean, w1t_ref[...], preferred_element_type=jnp.float32) + b1_ref[...]
    h = jnp.maximum(h, 0.0)                           # ReLU
    s = jnp.dot(h, w2t_ref[...], preferred_element_type=jnp.float32) + b2_ref[...]
    s = jax.nn.sigmoid(s)                             # (Bt, C)

    # x *= temp : broadcast the per-channel scale over the spatial (lane) axis.
    o_ref[...] = (xf * s[:, :, None]).astype(o_ref.dtype)


def _pick_block_batch(B, per_sample_bytes, budget_bytes, target_bytes=512 * 1024):
    """Pick the batch block Bt: double-buffered in+out slabs must fit `budget_bytes`;
    prefer the smallest Bt whose slab reaches ~`target_bytes` (amortizes per-step
    overhead while keeping the most grid steps for megacore); otherwise take the
    largest Bt that fits."""
    max_bt = max(1, budget_bytes // (4 * per_sample_bytes))
    divs = [d for d in range(1, B + 1) if B % d == 0 and d <= max_bt]
    if not divs:
        return 1
    good = [d for d in divs if d * per_sample_bytes >= target_bytes]
    if good:
        return min(good)
    return max(divs)


def af_forward(x, snr, w1, b1, w2, b2, *, vmem_budget_bytes=8 * 1024 * 1024):
    """x: (B, C, H, W); snr: scalar; w1: (C, C+1); b1: (C,); w2: (C, C); b2: (C,)."""
    B, C, H, W = x.shape
    HW = H * W
    x2 = x.reshape(B, C, HW)

    # Lane-dense spatial axis: pad to a multiple of 128 so stores are unmasked.
    HWp = ((HW + 127) // 128) * 128
    if HWp != HW:
        x2 = jnp.pad(x2, ((0, 0), (0, 0), (0, HWp - HW)))

    itemsize = jnp.dtype(x.dtype).itemsize
    bt = _pick_block_batch(B, C * HWp * itemsize, vmem_budget_bytes)
    # TODO(synk): for samples whose single (C, HWp) slab alone blows the VMEM budget,
    # add an HW grid axis with a two-pass (accumulate means, then scale) variant.

    # Glue: transpose the 1x1-conv weights for (Bt, C) @ (C, C) matmuls and fold the
    # constant SNR feature into the first bias:
    #   feat @ w1.T == mean @ w1[:, :C].T + snr * w1[:, C]
    f32 = jnp.float32
    w1t = jnp.transpose(w1[:, :C]).astype(f32)              # (C, C)
    b1f = (b1 + snr * w1[:, C]).reshape(1, C).astype(f32)   # (1, C)
    w2t = jnp.transpose(w2).astype(f32)                     # (C, C)
    b2r = b2.reshape(1, C).astype(f32)                      # (1, C)

    kernel = partial(af_kernel, inv_hw=1.0 / HW)

    out = pl.pallas_call(
        kernel,
        out_shape=jax.ShapeDtypeStruct((B, C, HWp), x.dtype),
        grid_spec=pltpu.PrefetchScalarGridSpec(
            num_scalar_prefetch=0,
            grid=(B // bt,),
            in_specs=[
                pl.BlockSpec((bt, C, HWp), lambda i: (i, 0, 0)),
                pl.BlockSpec((C, C), lambda i: (0, 0)),
                pl.BlockSpec((1, C), lambda i: (0, 0)),
                pl.BlockSpec((C, C), lambda i: (0, 0)),
                pl.BlockSpec((1, C), lambda i: (0, 0)),
            ],
            out_specs=pl.BlockSpec((bt, C, HWp), lambda i: (i, 0, 0)),
        ),
        compiler_params=pltpu.CompilerParams(
            dimension_semantics=("parallel",),
            vmem_limit_bytes=32 * 1024 * 1024,
        ),
    )(x2, w1t, b1f, w2t, b2r)

    if HWp != HW:
        out = out[..., :HW]
    return out.reshape(B, C, H, W)


def af_reference(x, snr, w1, b1, w2, b2):
    """Pure-JAX reference of the PyTorch forward pass."""
    B, C, H, W = x.shape
    mean = jnp.mean(x.astype(jnp.float32), axis=(2, 3))          # (B, C)
    feat = jnp.concatenate(
        [mean, jnp.full((B, 1), snr, jnp.float32)], axis=1)      # (B, C+1)
    h = jnp.maximum(feat @ w1.T + b1, 0.0)                       # (B, C)
    s = jax.nn.sigmoid(h @ w2.T + b2)                            # (B, C)
    return (x * s[:, :, None, None]).astype(x.dtype)


if __name__ == "__main__":
    B, C, H, W = 2, 4, 16, 16
    key = jax.random.PRNGKey(0)
    kx, kw1, kb1, kw2, kb2 = jax.random.split(key, 5)

    x = jax.random.normal(kx, (B, C, H, W), dtype=jnp.float32)
    snr = 2.5

    # Deterministic synthetic parameters (shapes from Conv1d(C+1, C, 1) / Conv1d(C, C, 1)).
    w1 = jax.random.normal(kw1, (C, C + 1), dtype=jnp.float32) * 0.2
    b1 = jax.random.normal(kb1, (C,), dtype=jnp.float32) * 0.1
    w2 = jax.random.normal(kw2, (C, C), dtype=jnp.float32) * 0.2
    b2 = jax.random.normal(kb2, (C,), dtype=jnp.float32) * 0.1

    out = af_forward(x, snr, w1, b1, w2, b2)
    out = jax.block_until_ready(out)

    ref = af_reference(x, snr, w1, b1, w2, b2)
    assert out.shape == (B, C, H, W)
    assert jnp.allclose(out, ref, atol=1e-5, rtol=1e-5), "mismatch vs reference"

    print("KERNEL_OK")
</pallas_src>

<mosaic_0001>
module attributes {stable_mosaic.version = 11 : i64} {
  func.func @af_kernel(%arg0: i32, %arg1: memref<2x4x256xf32, #tpu.memory_space<vmem>>, %arg2: memref<4x4xf32, #tpu.memory_space<vmem>>, %arg3: memref<1x4xf32, #tpu.memory_space<vmem>>, %arg4: memref<4x4xf32, #tpu.memory_space<vmem>>, %arg5: memref<1x4xf32, #tpu.memory_space<vmem>>, %arg6: memref<2x4x256xf32, #tpu.memory_space<vmem>>) attributes {dimension_semantics = [#tpu.dimension_semantics<parallel>], iteration_bounds = array<i64: 1>, scalar_prefetch = 0 : i64, scratch_operands = 0 : i64, tpu.core_type = #tpu.core_type<tc>, window_params = [{transform_indices = @transform_0, window_bounds = array<i64: 2, 4, 256>}, {pipeline_mode = #tpu.pipeline_mode<synchronous>, transform_indices = @transform_1, window_bounds = array<i64: 4, 4>}, {pipeline_mode = #tpu.pipeline_mode<synchronous>, transform_indices = @transform_2, window_bounds = array<i64: 1, 4>}, {pipeline_mode = #tpu.pipeline_mode<synchronous>, transform_indices = @transform_3, window_bounds = array<i64: 4, 4>}, {pipeline_mode = #tpu.pipeline_mode<synchronous>, transform_indices = @transform_4, window_bounds = array<i64: 1, 4>}, {transform_indices = @transform_5, window_bounds = array<i64: 2, 4, 256>}]} {
    %c0 = arith.constant 0 : index
    %c0_0 = arith.constant 0 : index
    %c0_1 = arith.constant 0 : index
    %0 = vector.load %arg1[%c0, %c0_0, %c0_1] : memref<2x4x256xf32, #tpu.memory_space<vmem>>, vector<2x4x256xf32>
    %cst = arith.constant dense<0.000000e+00> : vector<2x4xf32>
    %1 = vector.multi_reduction <add>, %0, %cst [2] : vector<2x4x256xf32> to vector<2x4xf32>
    %cst_2 = arith.constant 3.906250e-03 : f32
    %2 = vector.broadcast %cst_2 : f32 to vector<2x4xf32>
    %3 = arith.mulf %1, %2 : vector<2x4xf32>
    %c0_3 = arith.constant 0 : index
    %c0_4 = arith.constant 0 : index
    %4 = vector.load %arg2[%c0_3, %c0_4] : memref<4x4xf32, #tpu.memory_space<vmem>>, vector<4x4xf32>
    %cst_5 = arith.constant dense<0.000000e+00> : vector<2x4xf32>
    %5 = tpu.matmul %3, %4, %cst_5 {dimension_numbers = #tpu.dot_dimension_numbers<[1], [0], [0], [1], [0, 0, 1, 1], [], []>} : vector<2x4xf32>, vector<4x4xf32>, vector<2x4xf32> -> vector<2x4xf32>
    %c0_6 = arith.constant 0 : index
    %c0_7 = arith.constant 0 : index
    %6 = vector.load %arg3[%c0_6, %c0_7] : memref<1x4xf32, #tpu.memory_space<vmem>>, vector<1x4xf32>
    %7 = vector.broadcast %6 : vector<1x4xf32> to vector<2x4xf32>
    %8 = arith.addf %5, %7 : vector<2x4xf32>
    %cst_8 = arith.constant 0.000000e+00 : f32
    %9 = vector.broadcast %cst_8 : f32 to vector<2x4xf32>
    %10 = arith.maximumf %8, %9 : vector<2x4xf32>
    %c0_9 = arith.constant 0 : index
    %c0_10 = arith.constant 0 : index
    %11 = vector.load %arg4[%c0_9, %c0_10] : memref<4x4xf32, #tpu.memory_space<vmem>>, vector<4x4xf32>
    %cst_11 = arith.constant dense<0.000000e+00> : vector<2x4xf32>
    %12 = tpu.matmul %10, %11, %cst_11 {dimension_numbers = #tpu.dot_dimension_numbers<[1], [0], [0], [1], [0, 0, 1, 1], [], []>} : vector<2x4xf32>, vector<4x4xf32>, vector<2x4xf32> -> vector<2x4xf32>
    %c0_12 = arith.constant 0 : index
    %c0_13 = arith.constant 0 : index
    %13 = vector.load %arg5[%c0_12, %c0_13] : memref<1x4xf32, #tpu.memory_space<vmem>>, vector<1x4xf32>
    %14 = vector.broadcast %13 : vector<1x4xf32> to vector<2x4xf32>
    %15 = arith.addf %12, %14 : vector<2x4xf32>
    %16 = arith.negf %15 : vector<2x4xf32>
    %17 = math.exp %16 : vector<2x4xf32>
    %cst_14 = arith.constant 1.000000e+00 : f32
    %18 = vector.broadcast %cst_14 : f32 to vector<2x4xf32>
    %19 = arith.addf %18, %17 : vector<2x4xf32>
    %20 = arith.divf %18, %19 : vector<2x4xf32>
    %21 = vector.shape_cast %20 : vector<2x4xf32> to vector<2x4x1xf32>
    %22 = vector.broadcast %21 : vector<2x4x1xf32> to vector<2x4x256xf32>
    %23 = arith.mulf %0, %22 : vector<2x4x256xf32>
    %c0_15 = arith.constant 0 : index
    %c0_16 = arith.constant 0 : index
    %c0_17 = arith.constant 0 : index
    %24 = vector.load %arg6[%c0_15, %c0_16, %c0_17] : memref<2x4x256xf32, #tpu.memory_space<vmem>>, vector<2x4x256xf32>
    tpu.vector_store %arg6[%c0_15, %c0_16, %c0_17], %23 {strides = array<i32>} : memref<2x4x256xf32, #tpu.memory_space<vmem>>, vector<2x4x256xf32>,
    return
  }
  func.func @transform_0(%arg0: i32) -> (i32, i32, i32) {
    %c0_i32 = arith.constant 0 : i32
    %c0_i32_0 = arith.constant 0 : i32
    %c0_i32_1 = arith.constant 0 : i32
    return %arg0, %c0_i32, %c0_i32_0 : i32, i32, i32
  }
  func.func @transform_1(%arg0: i32) -> (i32, i32) {
    %c0_i32 = arith.constant 0 : i32
    %c0_i32_0 = arith.constant 0 : i32
    %c0_i32_1 = arith.constant 0 : i32
    return %c0_i32, %c0_i32_0 : i32, i32
  }
  func.func @transform_2(%arg0: i32) -> (i32, i32) {
    %c0_i32 = arith.constant 0 : i32
    %c0_i32_0 = arith.constant 0 : i32
    %c0_i32_1 = arith.constant 0 : i32
    return %c0_i32, %c0_i32_0 : i32, i32
  }
  func.func @transform_3(%arg0: i32) -> (i32, i32) {
    %c0_i32 = arith.constant 0 : i32
    %c0_i32_0 = arith.constant 0 : i32
    %c0_i32_1 = arith.constant 0 : i32
    return %c0_i32, %c0_i32_0 : i32, i32
  }
  func.func @transform_4(%arg0: i32) -> (i32, i32) {
    %c0_i32 = arith.constant 0 : i32
    %c0_i32_0 = arith.constant 0 : i32
    %c0_i32_1 = arith.constant 0 : i32
    return %c0_i32, %c0_i32_0 : i32, i32
  }
  func.func @transform_5(%arg0: i32) -> (i32, i32, i32) {
    %c0_i32 = arith.constant 0 : i32
    %c0_i32_0 = arith.constant 0 : i32
    %c0_i32_1 = arith.constant 0 : i32
    return %arg0, %c0_i32, %c0_i32_0 : i32, i32, i32
  }
}

</mosaic_0001>

<bundles_post_ra>
// kernel: tpu_custom_call.1
= control target key start
LH: loop header
LB: loop body
LE: loop exit
PB: predicated region body
PF: predicated region fallthrough
CT: control target
= control target key end

     0   :  { %10 = vsyncpa [#allocation3], 0  ;;  %s492_s0 = inlined_call_operand.hbm [shape: f32[2,4,256], index: 0, kind: input, shape index: {}]   ;;  %s493_s1 = inlined_call_operand.hbm [shape: f32[4,4], index: 1, kind: input, shape index: {}]   ;;  %s494_s2 = inlined_call_operand.vmem [shape: f32[1,4], index: 2, kind: input, shape index: {}]   ;;  %s495_s3 = inlined_call_operand.vmem [shape: f32[4,4], index: 3, kind: input, shape index: {}]   ;;  %s496_s4 = inlined_call_operand.vmem [shape: f32[1,4], index: 4, kind: input, shape index: {}]   ;;  %s497_s5 = inlined_call_operand.hbm [shape: f32[2,4,256], index: 5, kind: output, shape index: {}]  }
   0x1   :  { %11 = vsyncpa [#allocation6], 0 }
   0x2   :  { %12 = vsyncpa [#allocation4], 0  ;;  %s412_s18 = smov [#allocation2]  }
   0x3   :  { %s18_s19 = sshll.u32 %s412_s18, 4  ;;  %s19_s19 = int_to_ptr.vmem [resolvable:$true] %s18_s19 }
   0x4   :  { %s354_s20 = scalar_lea.vmem %s19_s19, 256  ;;  %p359_p1 = scmp.lt.s32.totalorder %s19_s19, %s19_s19 }
   0x5   :  { %p355_p0 = scmp.ne.s32.totalorder %s19_s19, %s354_s20  ;;  %p360_p2 = scmp.lt.s32.totalorder %s354_s20, %s354_s20 }
   0x7   :  { %p361_p3 = por %p360_p2, %p359_p1 }
   0x9   :  { %p362_p4 = pnand %p361_p3, %p355_p0 }
   0xb   :  { %365 = shalt.err (!%p362_p4)
}
   0xc   :  { %s413_s21 = smov 128   ;;  %s414_s22 = smov 8  }
   0xd   :  { %24 = dma.hbm_to_vmem [thread:$0]  %s492_s0, 256, %s19_s19, [#allocation3], %s413_s21, %s413_s21, %s414_s22  }
   0xe   :  { %s415_s25 = smov [#allocation5]  }
   0xf   :  { %s31_s26 = sshll.u32 %s415_s25, 4  ;;  %s32_s26 = int_to_ptr.vmem [resolvable:$true] %s31_s26 }
  0x10   :  { %s374_s27 = scalar_lea.vmem %s32_s26, 64  ;;  %p379_p6 = scmp.lt.s32.totalorder %s32_s26, %s32_s26 }
  0x11   :  { %p375_p5 = scmp.ne.s32.totalorder %s32_s26, %s374_s27  ;;  %p380_p7 = scmp.lt.s32.totalorder %s374_s27, %s374_s27 }
  0x13   :  { %p381_p8 = por %p380_p7, %p379_p6 }
  0x15   :  { %p382_p9 = pnand %p381_p8, %p375_p5 }
  0x17   :  { %385 = shalt.err (!%p382_p9)
}
  0x18   :  { %34 = dma.hbm_to_vmem [thread:$0]  %s493_s1, 64, %s32_s26, [#allocation6]  }
  0x19   :  { %406 = dma.done.wait [#allocation3], 256  }
  0x1a   :  { %407 = vsyncadd [#allocation3], 4294967040 }
  0x1b   :  { %408 = dma.done.wait [#allocation6], 64  }
  0x1c   :  { %409 = vsyncadd [#allocation6], 4294967232  ;;  %vm55_vm0 = vcmask 1043456   ;;  %v459_v0 = vld [vmem:[#allocation2] sm:$0xff]  ;;  %v461_v1 = vld [vmem:[#allocation2 + $0x8] sm:$0xff]  ;;  %v416_v11 = vmov 0.0   ;;  %v78_v12 = vlaneseq }
  0x1d   :  { %v51_v2 = vcombine.high %v459_v0, %v459_v0  ;;  %v56_v3 = vsel %vm55_vm0, %v459_v0, 0.0  ;;  %v52_v4 = vcombine.high %v461_v1, %v461_v1  ;;  %v61_v6 = vsel %vm55_vm0, %v461_v1, 0.0  ;;  %v68_v10 = vld [vmem:[#allocation5] sm:$0xf]  ;;  %322 = vmatprep.subr.mxu0 %v416_v11  ;;  %327 = vmatprep.subr.mxu1 %v416_v11  ;;  %v167_v23 = vld [vmem:[%s495_s3] sm:$0xf] }
  0x1e   :  { %vm417_vm1 = vmmov 0   ;;  %323 = vmatpush3.msk.msra.mxu0 %vm55_vm0, %v68_v10  ;;  %v79_v13 = vand.u32 127, %v78_v12  ;;  %v81_v14 = vshrl.u32 %v78_v12, 7  ;;  %vm88_vm2 = vcmask 1041409   ;;  %328 = vmatpush3.msk.msra.mxu1 %vm55_vm0, %v167_v23  ;;  %v311_v24 = vld [vmem:[%s494_s2] ss:$0 sm:$0xff] }
  0x1f   :  { %v57_v5 = vsel %vm55_vm0, %v51_v2, 0.0  ;;  %v62_v7 = vsel %vm55_vm0, %v52_v4, 0.0  ;;  %324 = vmatprep.mubr.msk.f32.mxu0 %vm417_vm1, %v416_v11  ;;  %329 = vmatprep.mubr.msk.f32.mxu1 %vm417_vm1, %v416_v11  ;;  %vm90_vm3 = vcmask 31744   ;;  %v314_v29 = vld [vmem:[%s496_s4] ss:$0 sm:$0xff]  ;;  %s419_s2 = smov [#allocation7]  }
  0x20   :  { %v58_v8 = vadd.f32 %v57_v5, %v56_v3  ;;  %v63_v9 = vadd.f32 %v62_v7, %v61_v6  ;;  %v82_v16 = vsub.s32 %v79_v13, %v81_v14  ;;  %v259_v36 = vsub.s32 0, %v81_v14  ;;  %s298_s3 = sshll.u32 %s419_s2, 4  ;;  %s299_s3 = int_to_ptr.vmem [resolvable:$true] %s298_s3 }
  0x21   :  { %v266_v39 = vsub.s32 1, %v81_v14  ;;  %v418_v41 = vmov 839922192   ;;  %s386_s4 = scalar_lea.vmem %s299_s3, 256  ;;  %p391_p11 = scmp.lt.s32.totalorder %s299_s3, %s299_s3 }
  0x22   :  { %59 = vadd.xlane.f32.xlu0 %v58_v8  ;;  %v274_v42 = vunpack.c.l.s4 %v418_v41  ;;  %p387_p10 = scmp.ne.s32.totalorder %s299_s3, %s386_s4  ;;  %p392_p12 = scmp.lt.s32.totalorder %s386_s4, %s386_s4 }
  0x24   :  { %v275_v43 = vunpack.c.0.s8 %v274_v42  ;;  %p393_p13 = por %p392_p12, %p391_p11 }
  0x26   :  { %64 = vadd.xlane.f32.xlu0 %v63_v9  ;;  %v278_v44 = vsub.s32 %v275_v43, %v81_v14  ;;  %p394_p0 = pnand %p393_p13, %p387_p10 }
  0xab   :  { %v60_v15 = vpop.xlane.xlu0 %59 }
  0xac   :  { %v66_v17 = vmul.f32 0.00390625, %v60_v15 }
  0xae   :  { %v83_v20 = vrot.slane %v66_v17, %v82_v16 }
  0xaf   :  { %v65_v18 = vpop.xlane.xlu0 %64 }
  0xb0   :  { %v67_v19 = vmul.f32 0.00390625, %v65_v18 }
  0xb2   :  { %v87_v21 = vrot.slane %v67_v19, %v82_v16 }
  0xb4   :  { %v89_v22 = vsel %vm88_vm2, %v87_v21, %v83_v20 }
  0xb5   :  { %325 = vmatmul.mubr.msk.f32.vlgmr.msra.gmra.mxu0 %vm90_vm3, %v89_v22 }
 0x175   :  { %v162_v25 = vpop.f32.mrf.mxu0 }
 0x176   :  { %v163_v26 = vadd.f32 %v311_v24, %v162_v25 }
 0x177   :  { %v326_v27 = vpop.f32.mrf.mxu0 }
 0x178   :  { %v166_v28 = vmax.f32 %v163_v26, 0.0 }
 0x17a   :  { %330 = vmatmul.mubr.msk.f32.vlgmr.msra.gmra.mxu1 %vm90_vm3, %v166_v28 }
 0x23a   :  { %v247_v30 = vpop.f32.mrf.mxu1 }
 0x23b   :  { %v248_v31 = vadd.f32 %v314_v29, %v247_v30 }
 0x23c   :  { %v331_v32 = vpop.f32.mrf.mxu1 }
 0x23d   :  { %v317_v33 = vmul.f32 -1.442695, %v248_v31 }
 0x23f   :  { %342 = vpow2.f32 %v317_v33 }
 0x24c   :  { %v343_v34 = vpop.eup %342 }
 0x24d   :  { %v254_v35 = vadd.f32 1.0, %v343_v34 }
 0x24f   :  { %344 = vrcp.f32 %v254_v35 }
 0x25c   :  { %v345_v37 = vpop.eup %344 }
 0x25d   :  { %v260_v38 = vrot.slane %v345_v37, %v259_v36  ;;  %v267_v40 = vrot.slane %v345_v37, %v266_v39 }
 0x25f   :  { %262 = vbcast.lane.b32.xlu1 %v260_v38, 256 }
 0x263   :  { %269 = vbcast.lane.b32.xlu1 %v267_v40, 256 }
 0x2d1   :  { %v263_v45 = vpop.permute.xlu1 %262 }
 0x2d2   :  { %v279_v46 = vrot.slane %v263_v45, %v278_v44 }
 0x2d4   :  { %v289_v47 = vmul.f32 %v279_v46, %v459_v0 }
 0x2d5   :  { %v270_v48 = vpop.permute.xlu1 %269 }
 0x2d6   :  { %291 = vst [vmem:[#allocation7] sm:$0xff] %v289_v47  ;;  %v286_v49 = vrot.slane %v270_v48, %v278_v44 }
 0x2d8   :  { %v290_v50 = vmul.f32 %v286_v49, %v461_v1 }
 0x2da   :  { %292 = vst [vmem:[#allocation7 + $0x8] sm:$0xff] %v290_v50 }
 0x2db   :  { %397 = shalt.err (!%p394_p0)
}
 0x2dc   :  { %304 = dma.vmem_to_hbm [thread:$0]  %s299_s3, 256, %s497_s5, [#allocation4], %s413_s21, %s413_s21, %s414_s22  }
 0x2dd   :  { %410 = dma.done.wait [#allocation4], 256  }
 0x2de   :  { %411 = vsyncadd [#allocation4], 4294967040 }
 0x2df   :  { %308 = vsyncpa [#allocation3], 1 }
 0x2e0   :  { %309 = vsyncpa [#allocation6], 1 }
 0x2e1   :  { %310 = vsyncpa [#allocation4], 1 }

</bundles_post_ra>
